<compile_context>
chip_gen: v7x
topology: tpu7x:2x2x1
jax: 0.10.0
libtpu: 0.0.40
codegen_flags: <defaults>
</compile_context>

<pallas_src>
import functools

import jax
import jax.numpy as jnp
from jax.experimental import pallas as pl
from jax.experimental.pallas import tpu as pltpu


def _layernorm_kernel(x_ref, alpha_ref, bias_ref, o_ref, *, eps: float):
    # x_ref: (TILE_R, F), alpha_ref/bias_ref: (1, F)
    x = x_ref[...].astype(jnp.float32)
    n = x.shape[-1]

    mean = jnp.mean(x, axis=-1, keepdims=True)
    diff = x - mean
    # torch.Tensor.std defaults to the unbiased estimator (ddof=1).
    # (n == 1 yields 0/0 = NaN, matching torch.)
    var = jnp.sum(diff * diff, axis=-1, keepdims=True) / jnp.float32(n - 1)
    std = jnp.sqrt(var)

    # Per-row reciprocal (TILE_R values) on the EUP instead of an RxF VPU
    # divide; the normalization becomes a broadcast multiply.
    inv = pl.reciprocal(std + jnp.float32(eps), approx=False)

    alpha = alpha_ref[...].astype(jnp.float32)
    bias = bias_ref[...].astype(jnp.float32)

    y = (diff * inv) * alpha + bias
    o_ref[...] = y.astype(o_ref.dtype)


def _round_up(x: int, m: int) -> int:
    return ((x + m - 1) // m) * m


def _choose_tile_rows(rows: int, features: int, itemsize: int) -> int:
    # Sublane packing: f32 -> 8 rows/vreg, bf16 -> 16, int8/fp8 -> 32.
    row_multiple = {4: 8, 2: 16, 1: 32}.get(itemsize, 8)
    bytes_per_row = max(1, features * itemsize)

    # Target ~2 MiB input blocks, clamped to [256, 1024] rows.
    tile = (2 * 1024 * 1024) // bytes_per_row
    tile = min(max(tile, 256), 1024)

    # Cap double-buffered in+out blocks at ~40 MiB of live VMEM (safe on v7x's
    # 64 MiB/TC as well as v5e/v6e's 128 MiB).
    max_tile_vmem = max(row_multiple, (40 * 1024 * 1024) // (4 * bytes_per_row))
    tile = min(tile, max_tile_vmem)

    # Respect sublane packing, don't exceed the (rounded-up) row count.
    tile = max(row_multiple, (tile // row_multiple) * row_multiple)
    rows_up = _round_up(rows, row_multiple)
    tile = min(tile, rows_up)

    # Prefer >= 2 grid steps so both v7x TensorCores get work
    # (harmless on single-core v5e/v6e).
    if rows_up >= 2 * row_multiple and pl.cdiv(rows_up, tile) < 2:
        tile = _round_up(pl.cdiv(rows_up, 2), row_multiple)
    return tile


def layer_normalization(x: jax.Array,
                        alpha: jax.Array,
                        bias: jax.Array,
                        eps: float = 1e-6,
                        tile_rows: int | None = None) -> jax.Array:
    """LayerNormalization forward pass (Pallas TPU kernel).

    x:     (..., features)
    alpha: (features,)
    bias:  (features,)
    """
    features = x.shape[-1]
    orig_shape = x.shape
    x2d = x.reshape(-1, features)
    rows = x2d.shape[0]

    # Small-feature guard: below one 128-wide lane the kernel would run mostly
    # masked partial stores; plain XLA is at least as fast there.
    if features < 128:
        x32 = x2d.astype(jnp.float32)
        mean = jnp.mean(x32, axis=-1, keepdims=True)
        diff = x32 - mean
        var = jnp.sum(diff * diff, axis=-1, keepdims=True) / jnp.float32(features - 1)
        std = jnp.sqrt(var)
        y = (alpha.astype(jnp.float32) * diff / (std + jnp.float32(eps))
             + bias.astype(jnp.float32))
        return y.astype(x.dtype).reshape(orig_shape)

    itemsize = jnp.dtype(x.dtype).itemsize
    if tile_rows is None:
        tile_rows = _choose_tile_rows(rows, features, itemsize)

    grid = (pl.cdiv(rows, tile_rows),)
    alpha2d = alpha.reshape(1, features)
    bias2d = bias.reshape(1, features)

    # Explicit scoped-VMEM budget sized to the double-buffered in/out blocks
    # (+ headroom); stays <= ~48 MiB so it also fits v7x.
    block_bytes = tile_rows * features * itemsize
    vmem_limit = int(min(96 * 1024 * 1024,
                         max(16 * 1024 * 1024, 4 * block_bytes + 8 * 1024 * 1024)))

    cost = pl.CostEstimate(
        flops=7 * rows * features,
        transcendentals=2 * rows,
        bytes_accessed=2 * rows * features * itemsize + 2 * features * itemsize,
    )

    out2d = pl.pallas_call(
        functools.partial(_layernorm_kernel, eps=eps),
        out_shape=jax.ShapeDtypeStruct((rows, features), x.dtype),
        grid_spec=pltpu.PrefetchScalarGridSpec(
            num_scalar_prefetch=0,
            grid=grid,
            in_specs=[
                pl.BlockSpec((tile_rows, features), lambda i: (i, 0)),
                pl.BlockSpec((1, features), lambda i: (0, 0)),
                pl.BlockSpec((1, features), lambda i: (0, 0)),
            ],
            out_specs=pl.BlockSpec((tile_rows, features), lambda i: (i, 0)),
        ),
        compiler_params=pltpu.CompilerParams(
            dimension_semantics=("parallel",),
            vmem_limit_bytes=vmem_limit,
        ),
        cost_estimate=cost,
    )(x2d, alpha2d, bias2d)

    return out2d.reshape(orig_shape)


def _reference(x, alpha, bias, eps=1e-6):
    x32 = x.astype(jnp.float32)
    mean = jnp.mean(x32, axis=-1, keepdims=True)
    std = jnp.std(x32, axis=-1, keepdims=True, ddof=1)  # unbiased, like torch
    return (alpha * (x32 - mean) / (std + eps) + bias).astype(x.dtype)


if __name__ == "__main__":
    k0, k1, k2, k3 = jax.random.split(jax.random.PRNGKey(0), 4)

    # --- Main case: lane-aligned hidden size -> Pallas kernel path ----------
    batch, seq, hidden = 2, 8, 256
    x = jax.random.normal(k0, (batch, seq, hidden), dtype=jnp.float32)
    # Module init: nn.Parameter(torch.ones(features)) / torch.zeros(features)
    alpha = jnp.ones((hidden,), dtype=jnp.float32)
    bias = jnp.zeros((hidden,), dtype=jnp.float32)

    out = jax.block_until_ready(layer_normalization(x, alpha, bias, eps=1e-6))
    ref = _reference(x, alpha, bias, eps=1e-6)
    assert out.shape == x.shape and out.dtype == x.dtype
    assert jnp.allclose(out, ref, atol=1e-5, rtol=1e-5), "mismatch (main case)"

    # --- Ragged row count + non-trivial params: exercises masked last block -
    xr = jax.random.normal(k1, (3, 7, 256), dtype=jnp.float32)
    ar = jax.random.normal(k2, (256,), dtype=jnp.float32)
    br = jax.random.normal(k3, (256,), dtype=jnp.float32)
    outr = jax.block_until_ready(layer_normalization(xr, ar, br, eps=1e-6))
    refr = _reference(xr, ar, br, eps=1e-6)
    assert jnp.allclose(outr, refr, atol=1e-5, rtol=1e-5), "mismatch (ragged case)"

    # --- Small-features fallback (features < 128 -> plain XLA path) ---------
    xs = jax.random.normal(k1, (2, 8, 32), dtype=jnp.float32)
    outs = jax.block_until_ready(
        layer_normalization(xs, jnp.ones((32,), jnp.float32),
                            jnp.zeros((32,), jnp.float32), eps=1e-6))
    refs = _reference(xs, jnp.ones((32,), jnp.float32),
                      jnp.zeros((32,), jnp.float32), eps=1e-6)
    assert jnp.allclose(outs, refs, atol=1e-5, rtol=1e-5), "mismatch (small-F case)"

    print("KERNEL_OK")
</pallas_src>

<mosaic_0001>
module attributes {stable_mosaic.version = 11 : i64} {
  func.func @_layernorm_kernel(%arg0: i32, %arg1: memref<8x256xf32, #tpu.memory_space<vmem>>, %arg2: memref<1x256xf32, #tpu.memory_space<vmem>>, %arg3: memref<1x256xf32, #tpu.memory_space<vmem>>, %arg4: memref<8x256xf32, #tpu.memory_space<vmem>>) attributes {dimension_semantics = [#tpu.dimension_semantics<parallel>], iteration_bounds = array<i64: 2>, scalar_prefetch = 0 : i64, scratch_operands = 0 : i64, tpu.core_type = #tpu.core_type<tc>, window_params = [{transform_indices = @transform_0, window_bounds = array<i64: 8, 256>}, {pipeline_mode = #tpu.pipeline_mode<synchronous>, transform_indices = @transform_1, window_bounds = array<i64: 1, 256>}, {pipeline_mode = #tpu.pipeline_mode<synchronous>, transform_indices = @transform_2, window_bounds = array<i64: 1, 256>}, {transform_indices = @transform_3, window_bounds = array<i64: 8, 256>}]} {
    %c0 = arith.constant 0 : index
    %c0_0 = arith.constant 0 : index
    %0 = vector.load %arg1[%c0, %c0_0] : memref<8x256xf32, #tpu.memory_space<vmem>>, vector<8x256xf32>
    %cst = arith.constant dense<0.000000e+00> : vector<8xf32>
    %1 = vector.multi_reduction <add>, %0, %cst [1] : vector<8x256xf32> to vector<8xf32>
    %2 = vector.shape_cast %1 : vector<8xf32> to vector<8x1xf32>
    %cst_1 = arith.constant 2.560000e+02 : f32
    %3 = vector.broadcast %cst_1 : f32 to vector<8x1xf32>
    %4 = arith.divf %2, %3 : vector<8x1xf32>
    %5 = vector.broadcast %4 : vector<8x1xf32> to vector<8x256xf32>
    %6 = arith.subf %0, %5 : vector<8x256xf32>
    %7 = arith.mulf %6, %6 : vector<8x256xf32>
    %cst_2 = arith.constant dense<0.000000e+00> : vector<8xf32>
    %8 = vector.multi_reduction <add>, %7, %cst_2 [1] : vector<8x256xf32> to vector<8xf32>
    %9 = vector.shape_cast %8 : vector<8xf32> to vector<8x1xf32>
    %cst_3 = arith.constant 2.550000e+02 : f32
    %10 = vector.broadcast %cst_3 : f32 to vector<8x1xf32>
    %11 = arith.divf %9, %10 : vector<8x1xf32>
    %12 = math.sqrt %11 : vector<8x1xf32>
    %cst_4 = arith.constant 9.99999997E-7 : f32
    %13 = vector.broadcast %cst_4 : f32 to vector<8x1xf32>
    %14 = arith.addf %12, %13 : vector<8x1xf32>
    %15 = tpu.reciprocal %14 : vector<8x1xf32> -> vector<8x1xf32>
    %c0_5 = arith.constant 0 : index
    %c0_6 = arith.constant 0 : index
    %16 = vector.load %arg2[%c0_5, %c0_6] : memref<1x256xf32, #tpu.memory_space<vmem>>, vector<1x256xf32>
    %c0_7 = arith.constant 0 : index
    %c0_8 = arith.constant 0 : index
    %17 = vector.load %arg3[%c0_7, %c0_8] : memref<1x256xf32, #tpu.memory_space<vmem>>, vector<1x256xf32>
    %18 = vector.broadcast %15 : vector<8x1xf32> to vector<8x256xf32>
    %19 = arith.mulf %6, %18 : vector<8x256xf32>
    %20 = vector.broadcast %16 : vector<1x256xf32> to vector<8x256xf32>
    %21 = arith.mulf %19, %20 : vector<8x256xf32>
    %22 = vector.broadcast %17 : vector<1x256xf32> to vector<8x256xf32>
    %23 = arith.addf %21, %22 : vector<8x256xf32>
    %c0_9 = arith.constant 0 : index
    %c0_10 = arith.constant 0 : index
    %24 = vector.load %arg4[%c0_9, %c0_10] : memref<8x256xf32, #tpu.memory_space<vmem>>, vector<8x256xf32>
    tpu.vector_store %arg4[%c0_9, %c0_10], %23 {strides = array<i32>} : memref<8x256xf32, #tpu.memory_space<vmem>>, vector<8x256xf32>,
    return
  }
  func.func @transform_0(%arg0: i32) -> (i32, i32) {
    %c0_i32 = arith.constant 0 : i32
    %c0_i32_0 = arith.constant 0 : i32
    return %arg0, %c0_i32 : i32, i32
  }
  func.func @transform_1(%arg0: i32) -> (i32, i32) {
    %c0_i32 = arith.constant 0 : i32
    %c0_i32_0 = arith.constant 0 : i32
    %c0_i32_1 = arith.constant 0 : i32
    return %c0_i32, %c0_i32_0 : i32, i32
  }
  func.func @transform_2(%arg0: i32) -> (i32, i32) {
    %c0_i32 = arith.constant 0 : i32
    %c0_i32_0 = arith.constant 0 : i32
    %c0_i32_1 = arith.constant 0 : i32
    return %c0_i32, %c0_i32_0 : i32, i32
  }
  func.func @transform_3(%arg0: i32) -> (i32, i32) {
    %c0_i32 = arith.constant 0 : i32
    %c0_i32_0 = arith.constant 0 : i32
    return %arg0, %c0_i32 : i32, i32
  }
}

</mosaic_0001>

<bundles_post_ra>
// kernel: tpu_custom_call.1
= control target key start
LH: loop header
LB: loop body
LE: loop exit
PB: predicated region body
PF: predicated region fallthrough
CT: control target
= control target key end

     0   :  { %8 = vsyncpa [#allocation3], 0  ;;  %s686_s0 = inlined_call_operand.hbm [shape: f32[16,256], index: 0, kind: input, shape index: {}]   ;;  %s687_s1 = inlined_call_operand.vmem [shape: f32[1,256], index: 1, kind: input, shape index: {}]   ;;  %s688_s2 = inlined_call_operand.vmem [shape: f32[1,256], index: 2, kind: input, shape index: {}]   ;;  %s689_s3 = inlined_call_operand.hbm [shape: f32[16,256], index: 3, kind: output, shape index: {}]  }
   0x1   :  { %10 = vsyncpa [#allocation3 + $0x1], 0 }
   0x2   :  { %11 = vsyncpa [#allocation4], 0 }
   0x3   :  { %13 = vsyncpa [#allocation4 + $0x1], 0  ;;  %s515_s12 = smov 0   ;;  %s517_s13 = smov 0  }
   0x4   :  { %s519_s14 = smov 0   ;;  %s521_s15 = smov 0  }
   0x5 LB: > { %s536_s16 = sadd.s32 4294967295, %s491_s15   ;;  %s329_s17 = sadd.s32 4294967294, %s491_s15   ;;  %s491_s15 = sphi %s521_s15, %s704_s15   ;;  %s487_s14 = sphi %s519_s14, %s703_s14   ;;  %s483_s13 = sphi %s517_s13, %s702_s13   ;;  %s479_s12 = sphi %s515_s12, %s701_s12  }
   0x6   : > { %s540_s18 = sadd.s32 1, %s491_s15   ;;  %s26_s19 = sadd.s32 1, %s487_s14 }
   0x7   : > { %s23_s20 = ssub.s32 %s491_s15, %s540_s18  ;;  %p33_p0 = scmp.ne.s32.totalorder %s487_s14, %s483_s13 }
   0x8   : > { %p24_p1 = scmp.eq.s32.totalorder %s23_s20, 0  ;;  %p34_p2 = scmp.eq.s32.totalorder %s491_s15, 0 }
   0x9   : > { %p39_p3 = scmp.ne.s32.totalorder %s483_s13, %s479_s12  ;;  %p40_p4 = scmp.eq.s32.totalorder %s536_s16, 0 }
   0xa   : > { %s552_s21 = scalar_select %p24_p1, %s487_s14, %s26_s19  }
   0xb   : > { %p554_p5 = por %p34_p2, %p33_p0  ;;  %p558_p6 = por %p40_p4, %p39_p3 }
   0xc   : > { %p105_p7 = scmp.eq.s32.totalorder %s536_s16, 1  ;;  %p111_p8 = scmp.eq.s32.totalorder %s329_s17, 1 }
   0xd   : > { %p357_p10 = scmp.lt.s32.totalorder %s491_s15, 2  ;;  %s137_s26 = sand.u32 1, %s487_s14  }
   0xe   : > { %p565_p11 = por %p105_p7, %p33_p0  ;;  %p569_p12 = por %p111_p8, %p39_p3 }
   0xf   : > { %s343_s27 = sshll.u32 %s491_s15, 8  ;;  %s332_s28 = sshll.u32 %s137_s26, 4 }
  0x10   : > { %s693_s24 = scalar_select %p565_p11, 1, 0 }
  0x11   : > { %s694_s25 = scalar_select %p569_p12, 1, 0 }
  0x12   : > { %s578_s4 = scalar_lea.hbm %s686_s0, %s343_s27  ;;  %s141_s5 = scalar_lea.vmem [#allocation2], %s332_s28 }
  0x13   : > { %s149_s6 = sshll.u32 %s141_s5, 4  ;;  %p582_p13 = pnand %p357_p10, %p554_p5  ;;  %s586_s6 = int_to_ptr.vmem [resolvable:$true] %s149_s6 }
  0x14   : > { %s138_s8 = scalar_lea.sflag [#allocation3], %s137_s26  ;;  %s395_s9 = scalar_lea.hbm %s578_s4, 256 }
  0x15   : > { %p396_p2 = scmp.ne.s32.totalorder %s578_s4, %s395_s9  ;;  %p397_p3 = pneg %p582_p13 }
  0x16   : > { %s400_s17 = scalar_lea.hbm %s686_s0, 512  ;;  %p401_p5 = scmp.lt.u32.totalorder %s578_s4, %s686_s0 }
  0x17   : > { %p398_p4 = pnand %p397_p3, %p396_p2  ;;  %p402_p8 = scmp.lt.u32.totalorder %s400_s17, %s395_s9 }
  0x18   : > { %p404_p9 = scmp.lt.u32.totalorder %s395_s9, %s578_s4 }
  0x19   : > { %p399_p7 = pneg %p398_p4  ;;  %p403_p10 = por %p402_p8, %p401_p5 }
  0x1b   : > { %p405_p0 = por %p404_p9, %p403_p10 }
  0x1d   : > { %p406_p1 = pnand %p405_p0, %p399_p7 }
  0x1f   : > { %409 = shalt.err (!%p406_p1)
}
  0x20   : > { %s410_s22 = scalar_lea.vmem %s586_s6, 256  ;;  %s493_s26 = smov [#allocation2]  }
  0x21   : > { %p411_p2 = scmp.ne.s32.totalorder %s586_s6, %s410_s22  ;;  %s415_s27 = sshll.u32 %s493_s26, 4  ;;  %s416_s27 = int_to_ptr.vmem [resolvable:$false] %s415_s27 }
  0x22   : > { %s417_s28 = scalar_lea.vmem %s416_s27, 512  ;;  %p418_p11 = scmp.lt.s32.totalorder %s586_s6, %s416_s27 }
  0x23   : > { %p413_p4 = pnand %p411_p2, %p397_p3  ;;  %p419_p5 = scmp.lt.s32.totalorder %s417_s28, %s410_s22 }
  0x25   : > { %p414_p12 = pneg %p413_p4  ;;  %p420_p8 = por %p419_p5, %p418_p11 }
  0x27   : > { %p421_p9 = pnand %p420_p8, %p414_p12 }
  0x29   : > { %424 = shalt.err (!%p421_p9)
}
  0x2a   : > { %352 = dma.hbm_to_vmem [thread:$0]  (!%p582_p13), %s578_s4, 256, %s586_s6, %s138_s8  }
  0x2b   : > { %p696_p0 = scmp.lt.s32.totalorder %s491_s15, 3  ;;  %p697_p1 = scmp.ge.s32.totalorder %s491_s15, 1 }
  0x2d   : > { %p155_p3 = pnand %p697_p1, %p696_p0 }
  0x2e   : > { %s620_s29 = sand.u32 (!%p155_p3), 1, %s483_s13  }
  0x2f   : > { %158 = sbr.rel (%p155_p3) target bundleno = 400 (0x190), region = 32  ;;  %s336_s30 = sshll.u32 (!%p155_p3), %s620_s29, 4 }
  0x30   : > { %s161_s5 = scalar_lea.sflag (!%p155_p3), [#allocation3], %s620_s29  ;;  %s164_s7 = scalar_lea.vmem (!%p155_p3), [#allocation2], %s336_s30 }
  0x36   : > { %470 = dma.done.wait (%p558_p6), %s161_s5, 256  }
  0x37   : > { %472 = vsyncadd (%p558_p6), %s161_s5, 4294967040  ;;  %v187_v0 = vld [vmem:[%s164_s7] sm:$0xff]  ;;  %v188_v1 = vld [vmem:[%s164_s7 + $0x8] sm:$0xff]  ;;  %v217_v17 = vlaneseq  ;;  %s344_s9 = sshll.u32 %s536_s16, 8  ;;  %s186_s10 = scalar_lea.vmem [#allocation5], %s336_s30 }
  0x38   : > { %v189_v2 = vadd.f32 %v188_v1, %v187_v0  ;;  %v212_v22 = vld [vmem:[%s687_s1] sm:$0x3]  ;;  %s259_s11 = sshll.u32 %s186_s10, 4  ;;  %s642_s20 = scalar_lea.hbm %s689_s3, %s344_s9  ;;  %s644_s11 = int_to_ptr.vmem [resolvable:$true] %s259_s11 }
  0x39   : > { %v218_v19 = vshrl.u32 %v217_v17, 7  ;;  %v213_v23 = vld [vmem:[%s688_s2] sm:$0x3]  ;;  %s245_s16 = scalar_lea.sflag [#allocation4], %s620_s29  ;;  %s425_s22 = scalar_lea.vmem %s644_s11, 256 }
  0x3a   : > { %190 = vadd.xlane.f32.xlu0 %v189_v2  ;;  %p426_p6 = scmp.ne.s32.totalorder %s644_s11, %s425_s22  ;;  %p698_p11 = scmp.ne.s32.totalorder %s693_s24, 0 }
  0x3b   : > { %v219_v20 = vsub.s32 0, %v218_v19  ;;  %v223_v21 = vsub.s32 1, %v218_v19  ;;  %s494_s26 = smov [#allocation5]  }
  0x3c   : > { %p427_p12 = pnand %p426_p6, %p698_p11  ;;  %s429_s27 = sshll.u32 %s494_s26, 4  ;;  %s430_s27 = int_to_ptr.vmem [resolvable:$false] %s429_s27 }
  0x3d   : > { %v220_v24 = vrot.slane %v212_v22, %v219_v20  ;;  %v224_v25 = vrot.slane %v212_v22, %v223_v21  ;;  %v233_v29 = vrot.slane %v213_v23, %v219_v20  ;;  %v237_v30 = vrot.slane %v213_v23, %v223_v21  ;;  %s431_s28 = scalar_lea.vmem %s430_s27, 512  ;;  %p432_p7 = scmp.lt.s32.totalorder %s644_s11, %s430_s27 }
  0x3e   : > { %p428_p13 = pneg %p427_p12  ;;  %p433_p10 = scmp.lt.s32.totalorder %s431_s28, %s425_s22 }
  0x40   : > { %p434_p2 = por %p433_p10, %p432_p7 }
  0x42   : > { %p435_p4 = pnand %p434_p2, %p428_p13 }
  0xc7   : > { %v191_v3 = vpop.xlane.xlu0 %190 }
  0xc8   : > { %v193_v4 = vmul.f32 0.00390625, %v191_v3 }
  0xca   : > { %v194_v5 = vsub.f32 %v187_v0, %v193_v4  ;;  %v195_v6 = vsub.f32 %v188_v1, %v193_v4 }
  0xcc   : > { %v196_v7 = vmul.f32 %v194_v5, %v194_v5  ;;  %v197_v8 = vmul.f32 %v195_v6, %v195_v6 }
  0xce   : > { %v198_v9 = vadd.f32 %v197_v8, %v196_v7 }
  0xd0   : > { %199 = vadd.xlane.f32.xlu0 %v198_v9 }
 0x15d   : > { %v200_v10 = vpop.xlane.xlu0 %199 }
 0x15e   : > { %v202_v11 = vmul.f32 0.003921569, %v200_v10 }
 0x160   : > { %391 = vrsqrt.f32 %v202_v11  ;;  %vm205_vm0 = vcmp.eq.f32.partialorder %v202_v11, inf  ;;  %v208_v14 = vand.u32 2147483648, %v202_v11  ;;  %vm207_vm1 = vcmp.eq.f32.partialorder %v202_v11, 0.0 }
 0x16a   : > { %v392_v12 = vpop.eup %391 }
 0x16b   : > { %v204_v13 = vmul.f32 %v392_v12, %v202_v11 }
 0x16d   : > { %v206_v15 = vsel %vm205_vm0, %v202_v11, %v204_v13 }
 0x16e   : > { %v209_v16 = vsel %vm207_vm1, %v208_v14, %v206_v15 }
 0x16f   : > { %v210_v18 = vadd.f32 1e-06, %v209_v16 }
 0x171   : > { %393 = vrcp.f32 %v210_v18 }
 0x17b   : > { %v394_v26 = vpop.eup %393 }
 0x17c   : > { %v214_v27 = vmul.f32 %v394_v26, %v194_v5  ;;  %v215_v28 = vmul.f32 %v394_v26, %v195_v6 }
 0x17e   : > { %v227_v31 = vmul.f32 %v220_v24, %v214_v27  ;;  %v228_v32 = vmul.f32 %v224_v25, %v215_v28 }
 0x180   : > { %v240_v33 = vadd.f32 %v233_v29, %v227_v31  ;;  %v241_v34 = vadd.f32 %v237_v30, %v228_v32 }
 0x182   : > { %242 = vst [vmem:[%s186_s10] sm:$0xff] %v240_v33  ;;  %243 = vst [vmem:[%s186_s10 + $0x8] sm:$0xff] %v241_v34 }
 0x183   : > { %438 = shalt.err (!%p435_p4)
}
 0x184   : > { %s439_s29 = scalar_lea.hbm %s642_s20, 256  ;;  %s443_s7 = scalar_lea.hbm %s689_s3, 512 }
 0x185   : > { %p440_p5 = scmp.ne.s32.totalorder %s642_s20, %s439_s29  ;;  %p444_p0 = scmp.lt.u32.totalorder %s642_s20, %s689_s3 }
 0x186   : > { %p445_p1 = scmp.lt.u32.totalorder %s443_s7, %s439_s29  ;;  %p447_p6 = scmp.lt.u32.totalorder %s439_s29, %s642_s20 }
 0x187   : > { %p441_p8 = pnand %p440_p5, %p698_p11 }
 0x188   : > { %p446_p3 = por %p445_p1, %p444_p0 }
 0x189   : > { %p442_p9 = pneg %p441_p8 }
 0x18a   : > { %p448_p12 = por %p447_p6, %p446_p3 }
 0x18c   : > { %p449_p13 = pnand %p448_p12, %p442_p9 }
 0x18e   : > { %452 = shalt.err (!%p449_p13)
}
 0x18f   : > { %347 = dma.vmem_to_hbm [thread:$0]  (%p698_p11), %s644_s11, 256, %s642_s20, %s245_s16  }
 0x190 PF: > { %s271_s6 = sand.u32 1, %s479_s12   ;;  %p699_p7 = scmp.ne.s32.totalorder %s694_s25, 0 }
 0x191   : > { %p700_p10 = scmp.ge.s32.totalorder %s491_s15, 2  ;;  %s272_s8 = scalar_lea.sflag [#allocation4], %s271_s6 }
 0x193   : > { %p354_p2 = pnand %p700_p10, %p699_p7 }
 0x195   : > { %474 = dma.done.wait (!%p354_p2), %s272_s8, 256  }
 0x196   : > { %476 = vsyncadd (!%p354_p2), %s272_s8, 4294967040  ;;  %p16_p4 = scmp.ge.s32.totalorder %s540_s18, 4   ;;  %s701_s12 = smov %s483_s13 }
 0x197   : > { %s702_s13 = smov %s487_s14  ;;  %s703_s14 = smov %s552_s21 }
 0x198   : > { %s704_s15 = smov %s540_s18  ;;  %18 = sbr.rel (!%p16_p4) target bundleno = 5 (0x5), region = 77 }
 0x19f   :  { %277 = vsyncpa [#allocation3], 1 }
 0x1a0   :  { %279 = vsyncpa [#allocation3 + $0x1], 1 }
 0x1a1   :  { %280 = vsyncpa [#allocation4], 1 }
 0x1a2   :  { %282 = vsyncpa [#allocation4 + $0x1], 1 }

</bundles_post_ra>
